<compile_context>
chip_gen: v7x
topology: tpu7x:2x2x1
jax: 0.10.0
libtpu: 0.0.40
codegen_flags: <defaults>
</compile_context>

<pallas_src>
import functools

import jax
import jax.numpy as jnp
from jax.experimental import pallas as pl
from jax.experimental.pallas import tpu as pltpu


def _pixel_shuffle_kernel(x_ref, rmat_ref, pmat_ref, o_ref, *, r, C_blk):
    # x_ref:    (1, C_blk*r*r, H_blk, W)   input block (native float dtype)
    # rmat_ref: (r, W, W*r)     one-hot column scatter: R[j, w, q] = 1 iff q == w*r + j
    # pmat_ref: (H_blk*r, r*H_blk) one-hot row interleave: P[p, m] = 1 iff m == (p%r)*H_blk + p//r
    # o_ref:    (1, C_blk, H_blk*r, W*r)   output block
    f32 = jnp.float32
    pmat = pmat_ref[...]
    for cc in range(C_blk):                       # C_blk is kept small (<= 8)
        base = cc * r * r
        parts = []
        for i in range(r):
            # Lane interleave on the MXU: b[h, w*r + j] = x[base + i*r + j, h, w]
            b = None
            for j in range(r):
                d = jnp.dot(x_ref[0, base + i * r + j], rmat_ref[j],
                            preferred_element_type=f32)
                b = d if b is None else b + d
            parts.append(b)                       # (H_blk, W*r)
        # Rows ordered (i, h); reorder to (h, i) with a one-hot permutation matmul.
        y = parts[0] if r == 1 else jnp.concatenate(parts, axis=0)   # (r*H_blk, W*r)
        o = jnp.dot(pmat, y, preferred_element_type=f32)             # (H_blk*r, W*r)
        o_ref[0, cc] = o.astype(o_ref.dtype)


def _col_scatter(r, W, dtype):
    # R[j, w, q] = 1 iff q == w * r + j
    j = jnp.arange(r)[:, None, None]
    w = jnp.arange(W)[None, :, None]
    q = jnp.arange(W * r)[None, None, :]
    return (q == w * r + j).astype(dtype)


def _row_interleave(r, h_blk, dtype):
    # P[p, m] = 1 iff m == (p % r) * h_blk + (p // r)
    p = jnp.arange(h_blk * r)[:, None]
    m = jnp.arange(r * h_blk)[None, :]
    return (m == (p % r) * h_blk + (p // r)).astype(dtype)


def _pick_tiles(C_out, H, W, r, itemsize):
    """Pick (C_blk, H_blk): ~2 MiB per pipeline buffer, sublane-aligned blocks."""
    target = 2 * 1024 * 1024                       # ~2 MiB per buffer
    sub = {4: 8, 2: 16, 1: 32}.get(itemsize, 8)    # sublane quantum per dtype
    # H_blk: sublane-aligned divisor of H (capped at 128 rows), or full H.
    cands = [d for d in range(sub, min(H, 128) + 1, sub) if H % d == 0]
    if cands:
        fitting = [d for d in cands if r * r * d * W * itemsize <= target]
        H_blk = max(fitting) if fitting else min(cands)
    else:
        H_blk = H
    # C_blk: small channel group filling the remaining budget.
    slab = r * r * H_blk * W * itemsize
    cap = int(max(1, min(8, target // max(1, slab))))
    C_blk = 1
    for d in range(1, min(C_out, cap) + 1):
        if C_out % d == 0:
            C_blk = d
    return C_blk, H_blk


def sub_pixel(x, upscale_factor):
    """Pallas TPU equivalent of nn.PixelShuffle(upscale_factor).forward (NCHW)."""
    r = int(upscale_factor)
    N, C_in, H, W = x.shape
    assert C_in % (r * r) == 0, "channels must be divisible by upscale_factor**2"
    C_out = C_in // (r * r)

    # TODO(synk): integer inputs ride the float one-hot MXU path; exact only for |x| < 2**24.
    work_dtype = x.dtype if jnp.issubdtype(x.dtype, jnp.floating) else jnp.float32
    x_work = x.astype(work_dtype)
    itemsize = jnp.dtype(work_dtype).itemsize

    C_blk, H_blk = _pick_tiles(C_out, H, W, r, itemsize)

    rmat = _col_scatter(r, W, work_dtype)            # (r, W, W*r), resident in VMEM
    pmat = _row_interleave(r, H_blk, jnp.float32)    # (H_blk*r, r*H_blk)

    kernel = functools.partial(_pixel_shuffle_kernel, r=r, C_blk=C_blk)
    out_shape = jax.ShapeDtypeStruct((N, C_out, H * r, W * r), x.dtype)

    return pl.pallas_call(
        kernel,
        out_shape=out_shape,
        grid=(N, C_out // C_blk, H // H_blk),
        in_specs=[
            pl.BlockSpec((1, C_blk * r * r, H_blk, W),
                         lambda n, c, h: (n, c, h, 0)),
            # Constant block index -> fetched once, stays resident (no re-DMA).
            pl.BlockSpec((r, W, W * r), lambda n, c, h: (0, 0, 0)),
            pl.BlockSpec((H_blk * r, r * H_blk), lambda n, c, h: (0, 0)),
        ],
        out_specs=pl.BlockSpec((1, C_blk, H_blk * r, W * r),
                               lambda n, c, h: (n, c, h, 0)),
        compiler_params=pltpu.CompilerParams(
            dimension_semantics=("parallel", "parallel", "parallel"),
            vmem_limit_bytes=32 * 1024 * 1024,
        ),
    )(x_work, rmat, pmat)


def _pixel_shuffle_ref(x, r):
    # Pure-JAX reference (mirrors torch.nn.PixelShuffle semantics).
    N, C_in, H, W = x.shape
    C = C_in // (r * r)
    y = x.reshape(N, C, r, r, H, W)
    y = jnp.transpose(y, (0, 1, 4, 2, 5, 3))
    return y.reshape(N, C, H * r, W * r)


if __name__ == "__main__":
    key = jax.random.PRNGKey(0)
    cases = [
        ((2, 16, 8, 8), 2, jnp.float32),      # N=2, C_in=16 -> (2, 4, 16, 16)
        ((1, 36, 8, 8), 3, jnp.float32),      # r=3           -> (1, 4, 24, 24)
        ((2, 8, 16, 16), 2, jnp.bfloat16),    # bf16          -> (2, 2, 32, 32)
    ]
    for idx, (shape, r, dtype) in enumerate(cases):
        key, k = jax.random.split(key)
        x = jax.random.normal(k, shape, dtype=dtype)
        y = jax.block_until_ready(sub_pixel(x, r))
        y_ref = _pixel_shuffle_ref(x, r)
        assert y.shape == y_ref.shape, (y.shape, y_ref.shape)
        assert jnp.allclose(y.astype(jnp.float32), y_ref.astype(jnp.float32),
                            atol=1e-5, rtol=1e-5), f"pixel shuffle mismatch (case {idx})"
    print("KERNEL_OK")
</pallas_src>

<mosaic_0001>
module attributes {stable_mosaic.version = 11 : i64} {
  func.func @_pixel_shuffle_kernel(%arg0: i32, %arg1: i32, %arg2: i32, %arg3: memref<1x16x8x8xf32, #tpu.memory_space<vmem>>, %arg4: memref<2x8x16xf32, #tpu.memory_space<vmem>>, %arg5: memref<16x16xf32, #tpu.memory_space<vmem>>, %arg6: memref<1x4x16x16xf32, #tpu.memory_space<vmem>>) attributes {dimension_semantics = [#tpu.dimension_semantics<parallel>, #tpu.dimension_semantics<parallel>, #tpu.dimension_semantics<parallel>], iteration_bounds = array<i64: 2, 1, 1>, scalar_prefetch = 0 : i64, scratch_operands = 0 : i64, tpu.core_type = #tpu.core_type<tc>, window_params = [{transform_indices = @transform_0, window_bounds = array<i64: 1, 16, 8, 8>}, {pipeline_mode = #tpu.pipeline_mode<synchronous>, transform_indices = @transform_1, window_bounds = array<i64: 2, 8, 16>}, {pipeline_mode = #tpu.pipeline_mode<synchronous>, transform_indices = @transform_2, window_bounds = array<i64: 16, 16>}, {transform_indices = @transform_3, window_bounds = array<i64: 1, 4, 16, 16>}]} {
    %c0 = arith.constant 0 : index
    %c0_0 = arith.constant 0 : index
    %0 = vector.load %arg5[%c0, %c0_0] : memref<16x16xf32, #tpu.memory_space<vmem>>, vector<16x16xf32>
    %c0_1 = arith.constant 0 : index
    %c0_2 = arith.constant 0 : index
    %c0_3 = arith.constant 0 : index
    %c0_4 = arith.constant 0 : index
    %1 = vector.load %arg3[%c0_1, %c0_2, %c0_3, %c0_4] : memref<1x16x8x8xf32, #tpu.memory_space<vmem>>, vector<1x1x8x8xf32>
    %2 = vector.shape_cast %1 : vector<1x1x8x8xf32> to vector<8x8xf32>
    %c0_5 = arith.constant 0 : index
    %c0_6 = arith.constant 0 : index
    %c0_7 = arith.constant 0 : index
    %3 = vector.load %arg4[%c0_5, %c0_6, %c0_7] : memref<2x8x16xf32, #tpu.memory_space<vmem>>, vector<1x8x16xf32>
    %4 = vector.shape_cast %3 : vector<1x8x16xf32> to vector<8x16xf32>
    %cst = arith.constant dense<0.000000e+00> : vector<8x16xf32>
    %5 = tpu.matmul %2, %4, %cst {dimension_numbers = #tpu.dot_dimension_numbers<[1], [0], [0], [1], [0, 0, 1, 1], [], []>} : vector<8x8xf32>, vector<8x16xf32>, vector<8x16xf32> -> vector<8x16xf32>
    %c0_8 = arith.constant 0 : index
    %c1 = arith.constant 1 : index
    %c0_9 = arith.constant 0 : index
    %c0_10 = arith.constant 0 : index
    %6 = vector.load %arg3[%c0_8, %c1, %c0_9, %c0_10] : memref<1x16x8x8xf32, #tpu.memory_space<vmem>>, vector<1x1x8x8xf32>
    %7 = vector.shape_cast %6 : vector<1x1x8x8xf32> to vector<8x8xf32>
    %c1_11 = arith.constant 1 : index
    %c0_12 = arith.constant 0 : index
    %c0_13 = arith.constant 0 : index
    %8 = vector.load %arg4[%c1_11, %c0_12, %c0_13] : memref<2x8x16xf32, #tpu.memory_space<vmem>>, vector<1x8x16xf32>
    %9 = vector.shape_cast %8 : vector<1x8x16xf32> to vector<8x16xf32>
    %cst_14 = arith.constant dense<0.000000e+00> : vector<8x16xf32>
    %10 = tpu.matmul %7, %9, %cst_14 {dimension_numbers = #tpu.dot_dimension_numbers<[1], [0], [0], [1], [0, 0, 1, 1], [], []>} : vector<8x8xf32>, vector<8x16xf32>, vector<8x16xf32> -> vector<8x16xf32>
    %11 = arith.addf %5, %10 : vector<8x16xf32>
    %c0_15 = arith.constant 0 : index
    %c2 = arith.constant 2 : index
    %c0_16 = arith.constant 0 : index
    %c0_17 = arith.constant 0 : index
    %12 = vector.load %arg3[%c0_15, %c2, %c0_16, %c0_17] : memref<1x16x8x8xf32, #tpu.memory_space<vmem>>, vector<1x1x8x8xf32>
    %13 = vector.shape_cast %12 : vector<1x1x8x8xf32> to vector<8x8xf32>
    %c0_18 = arith.constant 0 : index
    %c0_19 = arith.constant 0 : index
    %c0_20 = arith.constant 0 : index
    %14 = vector.load %arg4[%c0_18, %c0_19, %c0_20] : memref<2x8x16xf32, #tpu.memory_space<vmem>>, vector<1x8x16xf32>
    %15 = vector.shape_cast %14 : vector<1x8x16xf32> to vector<8x16xf32>
    %cst_21 = arith.constant dense<0.000000e+00> : vector<8x16xf32>
    %16 = tpu.matmul %13, %15, %cst_21 {dimension_numbers = #tpu.dot_dimension_numbers<[1], [0], [0], [1], [0, 0, 1, 1], [], []>} : vector<8x8xf32>, vector<8x16xf32>, vector<8x16xf32> -> vector<8x16xf32>
    %c0_22 = arith.constant 0 : index
    %c3 = arith.constant 3 : index
    %c0_23 = arith.constant 0 : index
    %c0_24 = arith.constant 0 : index
    %17 = vector.load %arg3[%c0_22, %c3, %c0_23, %c0_24] : memref<1x16x8x8xf32, #tpu.memory_space<vmem>>, vector<1x1x8x8xf32>
    %18 = vector.shape_cast %17 : vector<1x1x8x8xf32> to vector<8x8xf32>
    %c1_25 = arith.constant 1 : index
    %c0_26 = arith.constant 0 : index
    %c0_27 = arith.constant 0 : index
    %19 = vector.load %arg4[%c1_25, %c0_26, %c0_27] : memref<2x8x16xf32, #tpu.memory_space<vmem>>, vector<1x8x16xf32>
    %20 = vector.shape_cast %19 : vector<1x8x16xf32> to vector<8x16xf32>
    %cst_28 = arith.constant dense<0.000000e+00> : vector<8x16xf32>
    %21 = tpu.matmul %18, %20, %cst_28 {dimension_numbers = #tpu.dot_dimension_numbers<[1], [0], [0], [1], [0, 0, 1, 1], [], []>} : vector<8x8xf32>, vector<8x16xf32>, vector<8x16xf32> -> vector<8x16xf32>
    %22 = arith.addf %16, %21 : vector<8x16xf32>
    %23 = tpu.concatenate %11, %22 in 0 : vector<8x16xf32>, vector<8x16xf32> -> vector<16x16xf32>
    %cst_29 = arith.constant dense<0.000000e+00> : vector<16x16xf32>
    %24 = tpu.matmul %0, %23, %cst_29 {dimension_numbers = #tpu.dot_dimension_numbers<[1], [0], [0], [1], [0, 0, 1, 1], [], []>} : vector<16x16xf32>, vector<16x16xf32>, vector<16x16xf32> -> vector<16x16xf32>
    %c0_30 = arith.constant 0 : index
    %c0_31 = arith.constant 0 : index
    %c0_32 = arith.constant 0 : index
    %c0_33 = arith.constant 0 : index
    %25 = vector.load %arg6[%c0_30, %c0_31, %c0_32, %c0_33] : memref<1x4x16x16xf32, #tpu.memory_space<vmem>>, vector<1x1x16x16xf32>
    %26 = vector.shape_cast %25 : vector<1x1x16x16xf32> to vector<16x16xf32>
    %27 = vector.shape_cast %24 : vector<16x16xf32> to vector<1x1x16x16xf32>
    tpu.vector_store %arg6[%c0_30, %c0_31, %c0_32, %c0_33], %27 {strides = array<i32>} : memref<1x4x16x16xf32, #tpu.memory_space<vmem>>, vector<1x1x16x16xf32>,
    %c0_34 = arith.constant 0 : index
    %c4 = arith.constant 4 : index
    %c0_35 = arith.constant 0 : index
    %c0_36 = arith.constant 0 : index
    %28 = vector.load %arg3[%c0_34, %c4, %c0_35, %c0_36] : memref<1x16x8x8xf32, #tpu.memory_space<vmem>>, vector<1x1x8x8xf32>
    %29 = vector.shape_cast %28 : vector<1x1x8x8xf32> to vector<8x8xf32>
    %c0_37 = arith.constant 0 : index
    %c0_38 = arith.constant 0 : index
    %c0_39 = arith.constant 0 : index
    %30 = vector.load %arg4[%c0_37, %c0_38, %c0_39] : memref<2x8x16xf32, #tpu.memory_space<vmem>>, vector<1x8x16xf32>
    %31 = vector.shape_cast %30 : vector<1x8x16xf32> to vector<8x16xf32>
    %cst_40 = arith.constant dense<0.000000e+00> : vector<8x16xf32>
    %32 = tpu.matmul %29, %31, %cst_40 {dimension_numbers = #tpu.dot_dimension_numbers<[1], [0], [0], [1], [0, 0, 1, 1], [], []>} : vector<8x8xf32>, vector<8x16xf32>, vector<8x16xf32> -> vector<8x16xf32>
    %c0_41 = arith.constant 0 : index
    %c5 = arith.constant 5 : index
    %c0_42 = arith.constant 0 : index
    %c0_43 = arith.constant 0 : index
    %33 = vector.load %arg3[%c0_41, %c5, %c0_42, %c0_43] : memref<1x16x8x8xf32, #tpu.memory_space<vmem>>, vector<1x1x8x8xf32>
    %34 = vector.shape_cast %33 : vector<1x1x8x8xf32> to vector<8x8xf32>
    %c1_44 = arith.constant 1 : index
    %c0_45 = arith.constant 0 : index
    %c0_46 = arith.constant 0 : index
    %35 = vector.load %arg4[%c1_44, %c0_45, %c0_46] : memref<2x8x16xf32, #tpu.memory_space<vmem>>, vector<1x8x16xf32>
    %36 = vector.shape_cast %35 : vector<1x8x16xf32> to vector<8x16xf32>
    %cst_47 = arith.constant dense<0.000000e+00> : vector<8x16xf32>
    %37 = tpu.matmul %34, %36, %cst_47 {dimension_numbers = #tpu.dot_dimension_numbers<[1], [0], [0], [1], [0, 0, 1, 1], [], []>} : vector<8x8xf32>, vector<8x16xf32>, vector<8x16xf32> -> vector<8x16xf32>
    %38 = arith.addf %32, %37 : vector<8x16xf32>
    %c0_48 = arith.constant 0 : index
    %c6 = arith.constant 6 : index
    %c0_49 = arith.constant 0 : index
    %c0_50 = arith.constant 0 : index
    %39 = vector.load %arg3[%c0_48, %c6, %c0_49, %c0_50] : memref<1x16x8x8xf32, #tpu.memory_space<vmem>>, vector<1x1x8x8xf32>
    %40 = vector.shape_cast %39 : vector<1x1x8x8xf32> to vector<8x8xf32>
    %c0_51 = arith.constant 0 : index
    %c0_52 = arith.constant 0 : index
    %c0_53 = arith.constant 0 : index
    %41 = vector.load %arg4[%c0_51, %c0_52, %c0_53] : memref<2x8x16xf32, #tpu.memory_space<vmem>>, vector<1x8x16xf32>
    %42 = vector.shape_cast %41 : vector<1x8x16xf32> to vector<8x16xf32>
    %cst_54 = arith.constant dense<0.000000e+00> : vector<8x16xf32>
    %43 = tpu.matmul %40, %42, %cst_54 {dimension_numbers = #tpu.dot_dimension_numbers<[1], [0], [0], [1], [0, 0, 1, 1], [], []>} : vector<8x8xf32>, vector<8x16xf32>, vector<8x16xf32> -> vector<8x16xf32>
    %c0_55 = arith.constant 0 : index
    %c7 = arith.constant 7 : index
    %c0_56 = arith.constant 0 : index
    %c0_57 = arith.constant 0 : index
    %44 = vector.load %arg3[%c0_55, %c7, %c0_56, %c0_57] : memref<1x16x8x8xf32, #tpu.memory_space<vmem>>, vector<1x1x8x8xf32>
    %45 = vector.shape_cast %44 : vector<1x1x8x8xf32> to vector<8x8xf32>
    %c1_58 = arith.constant 1 : index
    %c0_59 = arith.constant 0 : index
    %c0_60 = arith.constant 0 : index
    %46 = vector.load %arg4[%c1_58, %c0_59, %c0_60] : memref<2x8x16xf32, #tpu.memory_space<vmem>>, vector<1x8x16xf32>
    %47 = vector.shape_cast %46 : vector<1x8x16xf32> to vector<8x16xf32>
    %cst_61 = arith.constant dense<0.000000e+00> : vector<8x16xf32>
    %48 = tpu.matmul %45, %47, %cst_61 {dimension_numbers = #tpu.dot_dimension_numbers<[1], [0], [0], [1], [0, 0, 1, 1], [], []>} : vector<8x8xf32>, vector<8x16xf32>, vector<8x16xf32> -> vector<8x16xf32>
    %49 = arith.addf %43, %48 : vector<8x16xf32>
    %50 = tpu.concatenate %38, %49 in 0 : vector<8x16xf32>, vector<8x16xf32> -> vector<16x16xf32>
    %cst_62 = arith.constant dense<0.000000e+00> : vector<16x16xf32>
    %51 = tpu.matmul %0, %50, %cst_62 {dimension_numbers = #tpu.dot_dimension_numbers<[1], [0], [0], [1], [0, 0, 1, 1], [], []>} : vector<16x16xf32>, vector<16x16xf32>, vector<16x16xf32> -> vector<16x16xf32>
    %c0_63 = arith.constant 0 : index
    %c1_64 = arith.constant 1 : index
    %c0_65 = arith.constant 0 : index
    %c0_66 = arith.constant 0 : index
    %52 = vector.load %arg6[%c0_63, %c1_64, %c0_65, %c0_66] : memref<1x4x16x16xf32, #tpu.memory_space<vmem>>, vector<1x1x16x16xf32>
    %53 = vector.shape_cast %52 : vector<1x1x16x16xf32> to vector<16x16xf32>
    %54 = vector.shape_cast %51 : vector<16x16xf32> to vector<1x1x16x16xf32>
    tpu.vector_store %arg6[%c0_63, %c1_64, %c0_65, %c0_66], %54 {strides = array<i32>} : memref<1x4x16x16xf32, #tpu.memory_space<vmem>>, vector<1x1x16x16xf32>,
    %c0_67 = arith.constant 0 : index
    %c8 = arith.constant 8 : index
    %c0_68 = arith.constant 0 : index
    %c0_69 = arith.constant 0 : index
    %55 = vector.load %arg3[%c0_67, %c8, %c0_68, %c0_69] : memref<1x16x8x8xf32, #tpu.memory_space<vmem>>, vector<1x1x8x8xf32>
    %56 = vector.shape_cast %55 : vector<1x1x8x8xf32> to vector<8x8xf32>
    %c0_70 = arith.constant 0 : index
    %c0_71 = arith.constant 0 : index
    %c0_72 = arith.constant 0 : index
    %57 = vector.load %arg4[%c0_70, %c0_71, %c0_72] : memref<2x8x16xf32, #tpu.memory_space<vmem>>, vector<1x8x16xf32>
    %58 = vector.shape_cast %57 : vector<1x8x16xf32> to vector<8x16xf32>
    %cst_73 = arith.constant dense<0.000000e+00> : vector<8x16xf32>
    %59 = tpu.matmul %56, %58, %cst_73 {dimension_numbers = #tpu.dot_dimension_numbers<[1], [0], [0], [1], [0, 0, 1, 1], [], []>} : vector<8x8xf32>, vector<8x16xf32>, vector<8x16xf32> -> vector<8x16xf32>
    %c0_74 = arith.constant 0 : index
    %c9 = arith.constant 9 : index
    %c0_75 = arith.constant 0 : index
    %c0_76 = arith.constant 0 : index
    %60 = vector.load %arg3[%c0_74, %c9, %c0_75, %c0_76] : memref<1x16x8x8xf32, #tpu.memory_space<vmem>>, vector<1x1x8x8xf32>
    %61 = vector.shape_cast %60 : vector<1x1x8x8xf32> to vector<8x8xf32>
    %c1_77 = arith.constant 1 : index
    %c0_78 = arith.constant 0 : index
    %c0_79 = arith.constant 0 : index
    %62 = vector.load %arg4[%c1_77, %c0_78, %c0_79] : memref<2x8x16xf32, #tpu.memory_space<vmem>>, vector<1x8x16xf32>
    %63 = vector.shape_cast %62 : vector<1x8x16xf32> to vector<8x16xf32>
    %cst_80 = arith.constant dense<0.000000e+00> : vector<8x16xf32>
    %64 = tpu.matmul %61, %63, %cst_80 {dimension_numbers = #tpu.dot_dimension_numbers<[1], [0], [0], [1], [0, 0, 1, 1], [], []>} : vector<8x8xf32>, vector<8x16xf32>, vector<8x16xf32> -> vector<8x16xf32>
    %65 = arith.addf %59, %64 : vector<8x16xf32>
    %c0_81 = arith.constant 0 : index
    %c10 = arith.constant 10 : index
    %c0_82 = arith.constant 0 : index
    %c0_83 = arith.constant 0 : index
    %66 = vector.load %arg3[%c0_81, %c10, %c0_82, %c0_83] : memref<1x16x8x8xf32, #tpu.memory_space<vmem>>, vector<1x1x8x8xf32>
    %67 = vector.shape_cast %66 : vector<1x1x8x8xf32> to vector<8x8xf32>
    %c0_84 = arith.constant 0 : index
    %c0_85 = arith.constant 0 : index
    %c0_86 = arith.constant 0 : index
    %68 = vector.load %arg4[%c0_84, %c0_85, %c0_86] : memref<2x8x16xf32, #tpu.memory_space<vmem>>, vector<1x8x16xf32>
    %69 = vector.shape_cast %68 : vector<1x8x16xf32> to vector<8x16xf32>
    %cst_87 = arith.constant dense<0.000000e+00> : vector<8x16xf32>
    %70 = tpu.matmul %67, %69, %cst_87 {dimension_numbers = #tpu.dot_dimension_numbers<[1], [0], [0], [1], [0, 0, 1, 1], [], []>} : vector<8x8xf32>, vector<8x16xf32>, vector<8x16xf32> -> vector<8x16xf32>
    %c0_88 = arith.constant 0 : index
    %c11 = arith.constant 11 : index
    %c0_89 = arith.constant 0 : index
    %c0_90 = arith.constant 0 : index
    %71 = vector.load %arg3[%c0_88, %c11, %c0_89, %c0_90] : memref<1x16x8x8xf32, #tpu.memory_space<vmem>>, vector<1x1x8x8xf32>
    %72 = vector.shape_cast %71 : vector<1x1x8x8xf32> to vector<8x8xf32>
    %c1_91 = arith.constant 1 : index
    %c0_92 = arith.constant 0 : index
    %c0_93 = arith.constant 0 : index
    %73 = vector.load %arg4[%c1_91, %c0_92, %c0_93] : memref<2x8x16xf32, #tpu.memory_space<vmem>>, vector<1x8x16xf32>
    %74 = vector.shape_cast %73 : vector<1x8x16xf32> to vector<8x16xf32>
    %cst_94 = arith.constant dense<0.000000e+00> : vector<8x16xf32>
    %75 = tpu.matmul %72, %74, %cst_94 {dimension_numbers = #tpu.dot_dimension_numbers<[1], [0], [0], [1], [0, 0, 1, 1], [], []>} : vector<8x8xf32>, vector<8x16xf32>, vector<8x16xf32> -> vector<8x16xf32>
    %76 = arith.addf %70, %75 : vector<8x16xf32>
    %77 = tpu.concatenate %65, %76 in 0 : vector<8x16xf32>, vector<8x16xf32> -> vector<16x16xf32>
    %cst_95 = arith.constant dense<0.000000e+00> : vector<16x16xf32>
    %78 = tpu.matmul %0, %77, %cst_95 {dimension_numbers = #tpu.dot_dimension_numbers<[1], [0], [0], [1], [0, 0, 1, 1], [], []>} : vector<16x16xf32>, vector<16x16xf32>, vector<16x16xf32> -> vector<16x16xf32>
    %c0_96 = arith.constant 0 : index
    %c2_97 = arith.constant 2 : index
    %c0_98 = arith.constant 0 : index
    %c0_99 = arith.constant 0 : index
    %79 = vector.load %arg6[%c0_96, %c2_97, %c0_98, %c0_99] : memref<1x4x16x16xf32, #tpu.memory_space<vmem>>, vector<1x1x16x16xf32>
    %80 = vector.shape_cast %79 : vector<1x1x16x16xf32> to vector<16x16xf32>
    %81 = vector.shape_cast %78 : vector<16x16xf32> to vector<1x1x16x16xf32>
    tpu.vector_store %arg6[%c0_96, %c2_97, %c0_98, %c0_99], %81 {strides = array<i32>} : memref<1x4x16x16xf32, #tpu.memory_space<vmem>>, vector<1x1x16x16xf32>,
    %c0_100 = arith.constant 0 : index
    %c12 = arith.constant 12 : index
    %c0_101 = arith.constant 0 : index
    %c0_102 = arith.constant 0 : index
    %82 = vector.load %arg3[%c0_100, %c12, %c0_101, %c0_102] : memref<1x16x8x8xf32, #tpu.memory_space<vmem>>, vector<1x1x8x8xf32>
    %83 = vector.shape_cast %82 : vector<1x1x8x8xf32> to vector<8x8xf32>
    %c0_103 = arith.constant 0 : index
    %c0_104 = arith.constant 0 : index
    %c0_105 = arith.constant 0 : index
    %84 = vector.load %arg4[%c0_103, %c0_104, %c0_105] : memref<2x8x16xf32, #tpu.memory_space<vmem>>, vector<1x8x16xf32>
    %85 = vector.shape_cast %84 : vector<1x8x16xf32> to vector<8x16xf32>
    %cst_106 = arith.constant dense<0.000000e+00> : vector<8x16xf32>
    %86 = tpu.matmul %83, %85, %cst_106 {dimension_numbers = #tpu.dot_dimension_numbers<[1], [0], [0], [1], [0, 0, 1, 1], [], []>} : vector<8x8xf32>, vector<8x16xf32>, vector<8x16xf32> -> vector<8x16xf32>
    %c0_107 = arith.constant 0 : index
    %c13 = arith.constant 13 : index
    %c0_108 = arith.constant 0 : index
    %c0_109 = arith.constant 0 : index
    %87 = vector.load %arg3[%c0_107, %c13, %c0_108, %c0_109] : memref<1x16x8x8xf32, #tpu.memory_space<vmem>>, vector<1x1x8x8xf32>
    %88 = vector.shape_cast %87 : vector<1x1x8x8xf32> to vector<8x8xf32>
    %c1_110 = arith.constant 1 : index
    %c0_111 = arith.constant 0 : index
    %c0_112 = arith.constant 0 : index
    %89 = vector.load %arg4[%c1_110, %c0_111, %c0_112] : memref<2x8x16xf32, #tpu.memory_space<vmem>>, vector<1x8x16xf32>
    %90 = vector.shape_cast %89 : vector<1x8x16xf32> to vector<8x16xf32>
    %cst_113 = arith.constant dense<0.000000e+00> : vector<8x16xf32>
    %91 = tpu.matmul %88, %90, %cst_113 {dimension_numbers = #tpu.dot_dimension_numbers<[1], [0], [0], [1], [0, 0, 1, 1], [], []>} : vector<8x8xf32>, vector<8x16xf32>, vector<8x16xf32> -> vector<8x16xf32>
    %92 = arith.addf %86, %91 : vector<8x16xf32>
    %c0_114 = arith.constant 0 : index
    %c14 = arith.constant 14 : index
    %c0_115 = arith.constant 0 : index
    %c0_116 = arith.constant 0 : index
    %93 = vector.load %arg3[%c0_114, %c14, %c0_115, %c0_116] : memref<1x16x8x8xf32, #tpu.memory_space<vmem>>, vector<1x1x8x8xf32>
    %94 = vector.shape_cast %93 : vector<1x1x8x8xf32> to vector<8x8xf32>
    %c0_117 = arith.constant 0 : index
    %c0_118 = arith.constant 0 : index
    %c0_119 = arith.constant 0 : index
    %95 = vector.load %arg4[%c0_117, %c0_118, %c0_119] : memref<2x8x16xf32, #tpu.memory_space<vmem>>, vector<1x8x16xf32>
    %96 = vector.shape_cast %95 : vector<1x8x16xf32> to vector<8x16xf32>
    %cst_120 = arith.constant dense<0.000000e+00> : vector<8x16xf32>
    %97 = tpu.matmul %94, %96, %cst_120 {dimension_numbers = #tpu.dot_dimension_numbers<[1], [0], [0], [1], [0, 0, 1, 1], [], []>} : vector<8x8xf32>, vector<8x16xf32>, vector<8x16xf32> -> vector<8x16xf32>
    %c0_121 = arith.constant 0 : index
    %c15 = arith.constant 15 : index
    %c0_122 = arith.constant 0 : index
    %c0_123 = arith.constant 0 : index
    %98 = vector.load %arg3[%c0_121, %c15, %c0_122, %c0_123] : memref<1x16x8x8xf32, #tpu.memory_space<vmem>>, vector<1x1x8x8xf32>
    %99 = vector.shape_cast %98 : vector<1x1x8x8xf32> to vector<8x8xf32>
    %c1_124 = arith.constant 1 : index
    %c0_125 = arith.constant 0 : index
    %c0_126 = arith.constant 0 : index
    %100 = vector.load %arg4[%c1_124, %c0_125, %c0_126] : memref<2x8x16xf32, #tpu.memory_space<vmem>>, vector<1x8x16xf32>
    %101 = vector.shape_cast %100 : vector<1x8x16xf32> to vector<8x16xf32>
    %cst_127 = arith.constant dense<0.000000e+00> : vector<8x16xf32>
    %102 = tpu.matmul %99, %101, %cst_127 {dimension_numbers = #tpu.dot_dimension_numbers<[1], [0], [0], [1], [0, 0, 1, 1], [], []>} : vector<8x8xf32>, vector<8x16xf32>, vector<8x16xf32> -> vector<8x16xf32>
    %103 = arith.addf %97, %102 : vector<8x16xf32>
    %104 = tpu.concatenate %92, %103 in 0 : vector<8x16xf32>, vector<8x16xf32> -> vector<16x16xf32>
    %cst_128 = arith.constant dense<0.000000e+00> : vector<16x16xf32>
    %105 = tpu.matmul %0, %104, %cst_128 {dimension_numbers = #tpu.dot_dimension_numbers<[1], [0], [0], [1], [0, 0, 1, 1], [], []>} : vector<16x16xf32>, vector<16x16xf32>, vector<16x16xf32> -> vector<16x16xf32>
    %c0_129 = arith.constant 0 : index
    %c3_130 = arith.constant 3 : index
    %c0_131 = arith.constant 0 : index
    %c0_132 = arith.constant 0 : index
    %106 = vector.load %arg6[%c0_129, %c3_130, %c0_131, %c0_132] : memref<1x4x16x16xf32, #tpu.memory_space<vmem>>, vector<1x1x16x16xf32>
    %107 = vector.shape_cast %106 : vector<1x1x16x16xf32> to vector<16x16xf32>
    %108 = vector.shape_cast %105 : vector<16x16xf32> to vector<1x1x16x16xf32>
    tpu.vector_store %arg6[%c0_129, %c3_130, %c0_131, %c0_132], %108 {strides = array<i32>} : memref<1x4x16x16xf32, #tpu.memory_space<vmem>>, vector<1x1x16x16xf32>,
    return
  }
  func.func @transform_0(%arg0: i32, %arg1: i32, %arg2: i32) -> (i32, i32, i32, i32) {
    %c0_i32 = arith.constant 0 : i32
    %c0_i32_0 = arith.constant 0 : i32
    return %arg0, %arg1, %arg2, %c0_i32 : i32, i32, i32, i32
  }
  func.func @transform_1(%arg0: i32, %arg1: i32, %arg2: i32) -> (i32, i32, i32) {
    %c0_i32 = arith.constant 0 : i32
    %c0_i32_0 = arith.constant 0 : i32
    %c0_i32_1 = arith.constant 0 : i32
    %c0_i32_2 = arith.constant 0 : i32
    return %c0_i32, %c0_i32_0, %c0_i32_1 : i32, i32, i32
  }
  func.func @transform_2(%arg0: i32, %arg1: i32, %arg2: i32) -> (i32, i32) {
    %c0_i32 = arith.constant 0 : i32
    %c0_i32_0 = arith.constant 0 : i32
    %c0_i32_1 = arith.constant 0 : i32
    return %c0_i32, %c0_i32_0 : i32, i32
  }
  func.func @transform_3(%arg0: i32, %arg1: i32, %arg2: i32) -> (i32, i32, i32, i32) {
    %c0_i32 = arith.constant 0 : i32
    %c0_i32_0 = arith.constant 0 : i32
    return %arg0, %arg1, %arg2, %c0_i32 : i32, i32, i32, i32
  }
}

</mosaic_0001>

<bundles_post_ra>
// kernel: tpu_custom_call.1
= control target key start
LH: loop header
LB: loop body
LE: loop exit
PB: predicated region body
PF: predicated region fallthrough
CT: control target
= control target key end

     0   :  { %8 = vsyncpa [#allocation3], 0  ;;  %s2544_s0 = inlined_call_operand.vmem [shape: f32[2,16,8,8], index: 0, kind: input, shape index: {}]   ;;  %s2545_s1 = inlined_call_operand.vmem [shape: f32[2,8,16], index: 1, kind: input, shape index: {}]   ;;  %s2546_s2 = inlined_call_operand.vmem [shape: f32[16,16], index: 2, kind: input, shape index: {}]   ;;  %s2547_s3 = inlined_call_operand.hbm [shape: f32[2,4,16,16], index: 3, kind: output, shape index: {}]  }
   0x1   :  { %10 = vsyncpa [#allocation3 + $0x1], 0  ;;  %s2272_s12 = smov 0   ;;  %s2274_s13 = smov 0  }
   0x2   :  { %s2276_s14 = smov 0   ;;  %s2278_s15 = smov 0  }
   0x3   :  { %s2280_s16 = smov 0   ;;  %s2282_s17 = smov 0  }
   0x4 LB: > { %s1856_s18 = sadd.s32 4294967295, %s2245_s17   ;;  %s1857_s19 = sadd.s32 4294967294, %s2245_s17   ;;  %s2245_s17 = sphi %s2282_s17, %s16_s17   ;;  %s2241_s16 = sphi %s2280_s16, %s2554_s16   ;;  %s2237_s15 = sphi %s2278_s15, %s2553_s15   ;;  %s2233_s14 = sphi %s2276_s14, %s2552_s14   ;;  %s2229_s13 = sphi %s2274_s13, %s2551_s13   ;;  %s2225_s12 = sphi %s2272_s12, %s2550_s12  }
   0x5   : > { %s35_s20 = sadd.s32 1, %s2241_s16  ;;  %s118_s21 = sadd.s32 1, %s2233_s14 }
   0x6   : > { %p37_p0 = scmp.ge.s32.totalorder %s35_s20, 2  ;;  %p128_p1 = scmp.ne.s32.totalorder %s2233_s14, %s2229_s13 }
   0x7   : > { %p129_p2 = scmp.eq.s32.totalorder %s1856_s18, 1  ;;  %p134_p3 = scmp.ne.s32.totalorder %s2229_s13, %s2225_s12 }
   0x8   : > { %s2556_s20 = smov (%p37_p0, %s35_s20), 0  ;;  %p135_p5 = scmp.eq.s32.totalorder %s1857_s19, 1 }
   0x9   : > { %p2312_p4 = por %p129_p2, %p128_p1  ;;  %s111_s23 = ssub.s32 %s2241_s16, %s2556_s20 }
   0xa   : > { %p1860_p6 = scmp.ge.s32.totalorder %s2245_s17, 1  ;;  %p116_p7 = scmp.eq.s32.totalorder %s111_s23, 0 }
   0xb   : > { %p2319_p8 = por %p135_p5, %p134_p3  ;;  %p175_p9 = scmp.lt.s32.totalorder %s2245_s17, 3 }
   0xc   : > { %s2325_s25 = scalar_select %p116_p7, %s2233_s14, %s118_s21  }
   0xd   : > { %p176_p10 = pnand %p1860_p6, %p175_p9 }
   0xe   : > { %v2330_v0 = vld [vmem:[%s2545_s1 + $0x8] sm:$0xff] (!%p176_p10)  ;;  %p207_p11 = scmp.lt.s32.totalorder (!%p176_p10), %s2237_s15, 1  ;;  %v2247_v1 = vmov (!%p176_p10), 0.0   ;;  %vm2248_vm0 = vmmov (!%p176_p10), 0   ;;  %vm229_vm1 = vcmask (!%p176_p10), 64512   ;;  %v2352_v2 = vld [vmem:[%s2545_s1] sm:$0xff] (!%p176_p10) }
   0xf   : > { %179 = sbr.rel (%p176_p10) target bundleno = 1171 (0x493), region = 32  ;;  %1968 = vmatprep.subr.mxu0 (!%p176_p10), %v2247_v1  ;;  %1978 = vmatprep.subr.mxu1 (!%p176_p10), %v2247_v1  ;;  %v2381_v8 = vld [vmem:[%s2546_s2] sm:$0xff] (!%p176_p10)  ;;  %vm526_vm2 = vcmask (!%p176_p10), 130048   ;;  %v2392_v15 = vld [vmem:[%s2546_s2 + $0x8] sm:$0xff] (!%p176_p10)  ;;  %s203_s18 = sand.u32 (!%p176_p10), 1, %s2229_s13  }
  0x10   : > { %1969 = vmatpush3.msra.mxu0 (!%p176_p10), %v2330_v0  ;;  %1970 = vmatprep.mubr.msk.f32.mxu0 (!%p176_p10), %vm2248_vm0, %v2247_v1  ;;  %s1861_s19 = sshll.u32 (!%p176_p10), %s203_s18, 6  ;;  %s1919_s23 = sshll.u32 (!%p176_p10), %s2237_s15, 10 }
  0x11   : > { %1979 = vmatpush3.msra.mxu1 (!%p176_p10), %v2330_v0  ;;  %1980 = vmatprep.mubr.msk.f32.mxu1 (!%p176_p10), %vm2248_vm0, %v2247_v1  ;;  %s2425_s21 = scalar_lea.vmem (!%p176_p10), [#allocation2], %s1861_s19  ;;  %s2498_s30 = scalar_lea.sflag (!%p176_p10), [#allocation3], %s203_s18 }
  0x12   : > { %1973 = vmatprep.subr.mxu0 (!%p176_p10), %v2247_v1  ;;  %1983 = vmatprep.subr.mxu1 (!%p176_p10), %v2247_v1  ;;  %s1769_s26 = sshll.u32 (!%p176_p10), %s2425_s21, 4  ;;  %s2249_s4 = smov (!%p176_p10), [#allocation2]   ;;  %s2490_s26 = int_to_ptr.vmem [resolvable:$true] %s1769_s26 }
  0x16   : > { %s208_s28 = scalar_select %p207_p11, %s2237_s15, 1 }
  0x17   : > { %s2167_s15 = scalar_lea.vmem %s2490_s26, 1024 }
  0x18   : > { %s1918_s29 = sshll.u32 %s208_s28, 7  ;;  %p2168_p12 = scmp.ne.s32.totalorder %s2490_s26, %s2167_s15 }
  0x19   : > { %s2347_s5 = scalar_lea.vmem %s2544_s0, %s1918_s29  ;;  %s2488_s29 = scalar_lea.hbm %s2547_s3, %s1919_s23 }
  0x1a   : > { %v1864_v3 = vld [vmem:[%s2347_s5 + $0x8] sm:$0xff]  ;;  %v1869_v4 = vld [vmem:[%s2347_s5 + $0x18] sm:$0xff]  ;;  %v223_v5 = vld [vmem:[%s2347_s5] sm:$0xff]  ;;  %p2169_p13 = pnand %p2168_p12, %p2312_p4 }
  0x1b   : > { %1971 = vmatmul.mubr.msk.f32.vlgmr.msra.gmra.mrb[0].mxu0 %vm229_vm1, %v1864_v3  ;;  %1981 = vmatmul.mubr.msk.f32.vlgmr.msra.gmra.mrb[0].mxu1 %vm229_vm1, %v1869_v4  ;;  %v1868_v6 = vld [vmem:[%s2347_s5 + $0x10] sm:$0xff]  ;;  %v1875_v7 = vld [vmem:[%s2347_s5 + $0x28] sm:$0xff]  ;;  %v1874_v9 = vld [vmem:[%s2347_s5 + $0x20] sm:$0xff] }
  0x1c   : > { %1974 = vmatpush3.msra.mxu0 %v2352_v2  ;;  %1984 = vmatpush3.msra.mxu1 %v2352_v2  ;;  %v1880_v16 = vld [vmem:[%s2347_s5 + $0x38] sm:$0xff]  ;;  %v1879_v17 = vld [vmem:[%s2347_s5 + $0x30] sm:$0xff]  ;;  %v1888_v20 = vld [vmem:[%s2347_s5 + $0x48] sm:$0xff]  ;;  %p2170_p0 = pneg %p2169_p13 }
  0x1d   : > { %1975 = vmatprep.mubr.msk.f32.mxu0 %vm2248_vm0, %v2247_v1  ;;  %1985 = vmatprep.mubr.msk.f32.mxu1 %vm2248_vm0, %v2247_v1  ;;  %v1887_v21 = vld [vmem:[%s2347_s5 + $0x40] sm:$0xff]  ;;  %v1893_v27 = vld [vmem:[%s2347_s5 + $0x58] sm:$0xff]  ;;  %v1892_v28 = vld [vmem:[%s2347_s5 + $0x50] sm:$0xff] }
  0x1e   : > { %1995 = vmatprep.subr.mxu1 %v2247_v1  ;;  %v1901_v31 = vld [vmem:[%s2347_s5 + $0x68] sm:$0xff]  ;;  %v1900_v32 = vld [vmem:[%s2347_s5 + $0x60] sm:$0xff]  ;;  %v1906_v38 = vld [vmem:[%s2347_s5 + $0x78] sm:$0xff] }
  0x1f   : > { %v1905_v39 = vld [vmem:[%s2347_s5 + $0x70] sm:$0xff]  ;;  %s2171_s5 = sshll.u32 %s2249_s4, 4  ;;  %s2172_s5 = int_to_ptr.vmem [resolvable:$false] %s2171_s5 }
  0x20   : > { %s2173_s6 = scalar_lea.vmem %s2172_s5, 2048  ;;  %p2174_p1 = scmp.lt.s32.totalorder %s2490_s26, %s2172_s5 }
  0x21   : > { %p2175_p2 = scmp.lt.s32.totalorder %s2173_s6, %s2167_s15 }
  0x23   : > { %1976 = vmatmul.mubr.msk.f32.vlgmr.msra.gmra.mrb[0].mxu0 %vm229_vm1, %v223_v5  ;;  %1986 = vmatmul.mubr.msk.f32.vlgmr.msra.gmra.mrb[0].mxu1 %vm229_vm1, %v1868_v6  ;;  %p2176_p3 = por %p2175_p2, %p2174_p1 }
  0x24   : > { %1996 = vmatpush3.msra.mxu1 %v2330_v0  ;;  %1997 = vmatprep.mubr.msk.f32.mxu1 %vm2248_vm0, %v2247_v1 }
  0x25   : > { %2000 = vmatprep.subr.mxu1 %v2247_v1  ;;  %1992 = vmatprep.mubr.msk.f32.mxu0 %vm526_vm2, %v2381_v8  ;;  %p2177_p5 = pnand %p2176_p3, %p2170_p0 }
  0x27   : > { %1998 = vmatmul.mubr.msk.f32.vlgmr.msra.gmra.mrb[2].mxu1 %vm229_vm1, %v1875_v7 }
  0x28   : > { %2001 = vmatpush3.msra.mxu1 %v2352_v2  ;;  %2002 = vmatprep.mubr.msk.f32.mxu1 %vm2248_vm0, %v2247_v1 }
  0x2f   : > { %2003 = vmatmul.mubr.msk.f32.vlgmr.msra.gmra.mrb[2].mxu1 %vm229_vm1, %v1874_v9 }
  0x30   : > { %2019 = vmatprep.mubr.msk.f32.mxu1 %vm526_vm2, %v2381_v8 }
  0xf6   : > { %v372_v10 = vpop.f32.mrb[0].mxu0  ;;  %v522_v11 = vpop.f32.mrb[0].mxu1 }
  0xf7   : > { %v2076_v12 = vpack.c.bf16 %v522_v11, %v372_v10  ;;  %v1977_v13 = vpop.f32.mrb[1].mxu0  ;;  %v1987_v14 = vpop.f32.mrb[1].mxu1 }
  0xf9   : > { %2077 = vmatprep.subr.bf16.mxu0 %v2076_v12 }
  0xfa   : > { %2079 = vmatpush3.bf16.msra.mxu0 %v2076_v12 }
  0xfb   : > { %2005 = vmatprep.subr.mxu0 %v2247_v1 }
  0xfd   : > { %1993 = vmatmul.mubr.msk.f32.vlgmr.msra.gmra.mrb[2].mxu0 %vm526_vm2, %v2392_v15 }
  0xfe   : > { %2006 = vmatpush3.msra.mxu0 %v2330_v0  ;;  %2007 = vmatprep.mubr.msk.f32.mxu0 %vm2248_vm0, %v2247_v1 }
  0xff   : > { %2010 = vmatprep.subr.mxu0 %v2247_v1 }
 0x101   : > { %2008 = vmatmul.mubr.msk.f32.vlgmr.msra.gmra.mrb[4].mxu0 %vm229_vm1, %v1880_v16 }
 0x102   : > { %2011 = vmatpush3.msra.mxu0 %v2352_v2  ;;  %2012 = vmatprep.mubr.msk.f32.mxu0 %vm2248_vm0, %v2247_v1  ;;  %v758_v18 = vpop.f32.mrb[2].mxu1 }
 0x103   : > { %2022 = vmatprep.subr.mxu0 %v2247_v1  ;;  %v2004_v19 = vpop.f32.mrb[3].mxu1 }
 0x109   : > { %2013 = vmatmul.mubr.msk.f32.vlgmr.msra.gmra.mrb[4].mxu0 %vm229_vm1, %v1879_v17 }
 0x10a   : > { %2023 = vmatpush3.msra.mxu0 %v2330_v0  ;;  %2024 = vmatprep.mubr.msk.f32.mxu0 %vm2248_vm0, %v2247_v1 }
 0x10b   : > { %2027 = vmatprep.subr.mxu0 %v2247_v1 }
 0x10d   : > { %2025 = vmatmul.mubr.msk.f32.vlgmr.msra.gmra.mrb[6].mxu0 %vm229_vm1, %v1888_v20 }
 0x10e   : > { %2028 = vmatpush3.msra.mxu0 %v2352_v2  ;;  %2029 = vmatprep.mubr.msk.f32.mxu0 %vm2248_vm0, %v2247_v1 }
 0x115   : > { %2030 = vmatmul.mubr.msk.f32.vlgmr.msra.gmra.mrb[6].mxu0 %vm229_vm1, %v1887_v21 }
 0x116   : > { %2046 = vmatprep.mubr.msk.f32.mxu0 %vm526_vm2, %v2381_v8 }
 0x1d0   : > { %v1994_v22 = vpop.f32.mrb[2].mxu0 }
 0x1d1   : > { %609 = vst.msk [vmem:[%s2425_s21 + $0x8] sm:$0xff] %vm526_vm2, %v1994_v22  ;;  %v599_v23 = vpop.f32.mrb[3].mxu0 }
 0x1d2   : > { %608 = vst.msk [vmem:[%s2425_s21] sm:$0xff] %vm526_vm2, %v599_v23 }
 0x1dc   : > { %v908_v24 = vpop.f32.mrb[4].mxu0 }
 0x1dd   : > { %v2080_v25 = vpack.c.bf16 %v908_v24, %v758_v18  ;;  %v2014_v26 = vpop.f32.mrb[5].mxu0 }
 0x1df   : > { %2081 = vmatprep.subr.bf16.mxu1 %v2080_v25 }
 0x1e0   : > { %2083 = vmatpush3.bf16.msra.mxu1 %v2080_v25 }
 0x1e1   : > { %2032 = vmatprep.subr.mxu1 %v2247_v1 }
 0x1e3   : > { %2020 = vmatmul.mubr.msk.f32.vlgmr.msra.gmra.mrb[4].mxu1 %vm526_vm2, %v2392_v15 }
 0x1e4   : > { %2033 = vmatpush3.msra.mxu1 %v2330_v0  ;;  %2034 = vmatprep.mubr.msk.f32.mxu1 %vm2248_vm0, %v2247_v1 }
 0x1e5   : > { %2037 = vmatprep.subr.mxu1 %v2247_v1 }
 0x1e7   : > { %2035 = vmatmul.mubr.msk.f32.vlgmr.msra.gmra.mrb[6].mxu1 %vm229_vm1, %v1893_v27 }
 0x1e8   : > { %2038 = vmatpush3.msra.mxu1 %v2352_v2  ;;  %2039 = vmatprep.mubr.msk.f32.mxu1 %vm2248_vm0, %v2247_v1  ;;  %v1138_v29 = vpop.f32.mrb[6].mxu0 }
 0x1e9   : > { %2049 = vmatprep.subr.mxu1 %v2247_v1  ;;  %v2031_v30 = vpop.f32.mrb[7].mxu0 }
 0x1ef   : > { %2040 = vmatmul.mubr.msk.f32.vlgmr.msra.gmra.mrb[6].mxu1 %vm229_vm1, %v1892_v28 }
 0x1f0   : > { %2050 = vmatpush3.msra.mxu1 %v2330_v0  ;;  %2051 = vmatprep.mubr.msk.f32.mxu1 %vm2248_vm0, %v2247_v1 }
 0x1f1   : > { %2054 = vmatprep.subr.mxu1 %v2247_v1 }
 0x1f3   : > { %2052 = vmatmul.mubr.msk.f32.vlgmr.msra.gmra.mrb[8].mxu1 %vm229_vm1, %v1901_v31 }
 0x1f4   : > { %2055 = vmatpush3.msra.mxu1 %v2352_v2  ;;  %2056 = vmatprep.mubr.msk.f32.mxu1 %vm2248_vm0, %v2247_v1 }
 0x1fb   : > { %2057 = vmatmul.mubr.msk.f32.vlgmr.msra.gmra.mrb[8].mxu1 %vm229_vm1, %v1900_v32 }
 0x1fc   : > { %2073 = vmatprep.mubr.msk.f32.mxu1 %vm526_vm2, %v2381_v8 }
 0x2b6   : > { %v2021_v33 = vpop.f32.mrb[4].mxu1 }
 0x2b7   : > { %1886 = vst.msk [vmem:[%s2425_s21 + $0x18] sm:$0xff] %vm526_vm2, %v2021_v33  ;;  %v978_v34 = vpop.f32.mrb[5].mxu1 }
 0x2b8   : > { %1885 = vst.msk [vmem:[%s2425_s21 + $0x10] sm:$0xff] %vm526_vm2, %v978_v34 }
 0x2c2   : > { %v1288_v35 = vpop.f32.mrb[6].mxu1 }
 0x2c3   : > { %v2084_v36 = vpack.c.bf16 %v1288_v35, %v1138_v29  ;;  %v2041_v37 = vpop.f32.mrb[7].mxu1 }
 0x2c5   : > { %2085 = vmatprep.subr.bf16.mxu0 %v2084_v36 }
 0x2c6   : > { %2087 = vmatpush3.bf16.msra.mxu0 %v2084_v36 }
 0x2c7   : > { %2059 = vmatprep.subr.mxu0 %v2247_v1 }
 0x2c9   : > { %2047 = vmatmul.mubr.msk.f32.vlgmr.msra.gmra.mrb[8].mxu0 %vm526_vm2, %v2392_v15 }
 0x2ca   : > { %2060 = vmatpush3.msra.mxu0 %v2330_v0  ;;  %2061 = vmatprep.mubr.msk.f32.mxu0 %vm2248_vm0, %v2247_v1 }
 0x2cb   : > { %2064 = vmatprep.subr.mxu0 %v2247_v1 }
 0x2cd   : > { %2062 = vmatmul.mubr.msk.f32.vlgmr.msra.gmra.mrb[10].mxu0 %vm229_vm1, %v1906_v38 }
 0x2ce   : > { %2065 = vmatpush3.msra.mxu0 %v2352_v2  ;;  %2066 = vmatprep.mubr.msk.f32.mxu0 %vm2248_vm0, %v2247_v1  ;;  %v1518_v40 = vpop.f32.mrb[8].mxu1 }
 0x2cf   : > { %v2058_v41 = vpop.f32.mrb[9].mxu1 }
 0x2d5   : > { %2067 = vmatmul.mubr.msk.f32.vlgmr.msra.gmra.mrb[10].mxu0 %vm229_vm1, %v1905_v39 }
 0x39c   : > { %v2048_v42 = vpop.f32.mrb[8].mxu0 }
 0x39d   : > { %1899 = vst.msk [vmem:[%s2425_s21 + $0x28] sm:$0xff] %vm526_vm2, %v2048_v42  ;;  %v1358_v43 = vpop.f32.mrb[9].mxu0 }
 0x39e   : > { %1898 = vst.msk [vmem:[%s2425_s21 + $0x20] sm:$0xff] %vm526_vm2, %v1358_v43 }
 0x3a8   : > { %v1668_v44 = vpop.f32.mrb[10].mxu0 }
 0x3a9   : > { %v2088_v45 = vpack.c.bf16 %v1668_v44, %v1518_v40  ;;  %v2068_v46 = vpop.f32.mrb[11].mxu0 }
 0x3ab   : > { %2089 = vmatprep.subr.bf16.mxu1 %v2088_v45 }
 0x3ac   : > { %2091 = vmatpush3.bf16.msra.mxu1 %v2088_v45 }
 0x3af   : > { %2074 = vmatmul.mubr.msk.f32.vlgmr.msra.gmra.mrb[10].mxu1 %vm526_vm2, %v2392_v15 }
 0x482   : > { %v2075_v47 = vpop.f32.mrb[10].mxu1 }
 0x483   : > { %1912 = vst.msk [vmem:[%s2425_s21 + $0x38] sm:$0xff] %vm526_vm2, %v2075_v47  ;;  %v1738_v48 = vpop.f32.mrb[11].mxu1 }
 0x484   : > { %1911 = vst.msk [vmem:[%s2425_s21 + $0x30] sm:$0xff] %vm526_vm2, %v1738_v48 }
 0x485   : > { %2180 = shalt.err (!%p2177_p5)
}
 0x486   : > { %s2181_s7 = scalar_lea.hbm %s2488_s29, 1024  ;;  %s2185_s10 = scalar_lea.hbm %s2547_s3, 2048 }
 0x487   : > { %p2182_p6 = scmp.ne.s32.totalorder %s2488_s29, %s2181_s7  ;;  %p2186_p10 = scmp.lt.u32.totalorder %s2488_s29, %s2547_s3 }
 0x488   : > { %p2187_p11 = scmp.lt.u32.totalorder %s2185_s10, %s2181_s7  ;;  %p2189_p13 = scmp.lt.u32.totalorder %s2181_s7, %s2488_s29 }
 0x489   : > { %p2183_p7 = pnand %p2182_p6, %p2312_p4 }
 0x48a   : > { %p2188_p12 = por %p2187_p11, %p2186_p10 }
 0x48b   : > { %p2184_p9 = pneg %p2183_p7 }
 0x48c   : > { %p2190_p0 = por %p2189_p13, %p2188_p12 }
 0x48e   : > { %p2191_p1 = pnand %p2190_p0, %p2184_p9 }
 0x490   : > { %2194 = shalt.err (!%p2191_p1)
}
 0x491   : > { %s2250_s19 = smov 128   ;;  %s2251_s21 = smov 8  }
 0x492   : > { %2108 = dma.vmem_to_hbm [thread:$0]  (%p2312_p4), %s2490_s26, 1024, %s2488_s29, %s2498_s30, %s2250_s19, %s2250_s19, %s2251_s21  }
 0x493 PF: > { %p2114_p2 = scmp.ge.s32.totalorder %s2245_s17, 2  ;;  %s1784_s23 = sand.u32 1, %s2225_s12  }
 0x494   : > { %s1785_s27 = scalar_lea.sflag [#allocation3], %s1784_s23 }
 0x495   : > { %p2111_p3 = pnand %p2114_p2, %p2319_p8 }
 0x497   : > { %2220 = dma.done.wait (!%p2111_p3), %s1785_s27, 1024  }
 0x498   : > { %2222 = vsyncadd (!%p2111_p3), %s1785_s27, 4294966272  ;;  %s16_s17 = sadd.s32 1, %s2245_s17   ;;  %s2550_s12 = smov %s2229_s13 }
 0x499   : > { %p13_p5 = scmp.ge.s32.totalorder %s16_s17, 4   ;;  %s2551_s13 = smov %s2233_s14 }
 0x49a   : > { %s2552_s14 = smov %s2325_s25  ;;  %s2553_s15 = smov %s2241_s16 }
 0x49b   : > { %s2554_s16 = smov %s2556_s20  ;;  %15 = sbr.rel (!%p13_p5) target bundleno = 4 (0x4), region = 86 }
 0x4a2   :  { %1790 = vsyncpa [#allocation3], 1 }
 0x4a3   :  { %1792 = vsyncpa [#allocation3 + $0x1], 1 }

</bundles_post_ra>
